<compile_context>
chip_gen: v6e
topology: v6e:2x2x1
jax: 0.10.0
libtpu: 0.0.40
codegen_flags: <defaults>
</compile_context>

<pallas_src>
import functools

import numpy as np
import jax
import jax.numpy as jnp
from jax.experimental import pallas as pl
from jax.experimental.pallas import tpu as pltpu

NEG_SLOPE = 1e-2  # F.leaky_relu negative_slope used by CNN_Flow_Layer


# ----------------------------------------------------------------------------- kernel
def _cnn_flow_kernel(x_ref, wvec_ref, lmbd_p_ref, lmbd_n_ref, ld_delta_ref, seg_ref,
                     bias_ref, z_ref, ld_ref, *, dilations, kernel_size, dim):
    """All flow layers fused for one packed batch tile.

    VMEM:  x (tr, W) packed activations, wvec (L,k,1,W) masked taps, lmbd_p/lmbd_n/ld_delta
           (L,1,W) per-lane tables, seg (W,P) 0/1 segment-sum matrix.
    SMEM:  bias (L,) conv biases (flat 1-D).
    Out:   z (tr, W) packed (un-reversed; wrapper applies the anti-diagonal R), ld (tr, P).
    """
    tile_r, W = x_ref.shape

    cur = x_ref[...]                                     # (tr, W) f32
    ld_lane = jnp.zeros((tile_r, W), jnp.float32)        # deferred logdet accumulator

    for l, dil in enumerate(dilations):
        # dilated Conv1d(1,1,k), right zero padded: tap j = masked-weight * lane-rotation.
        conv = wvec_ref[l, 0] * cur + bias_ref[l]
        for j in range(1, kernel_size):
            s = j * dil
            if s >= dim:                                 # tap reads only the zero pad: skip
                continue
            # rolled[lane] = cur[lane + s]; out-of-sample lanes are zeroed by the weight mask
            conv = conv + wvec_ref[l, j] * pltpu.roll(cur, shift=W - s, axis=1)

        pos = conv >= 0.0
        # skip=True, rescale=True, leaky slope folded into the selected lambda:
        #   y = x + where(conv>=0, lmbd, NEG_SLOPE*lmbd) * conv
        cur = cur + jnp.where(pos, lmbd_p_ref[l], lmbd_n_ref[l]) * conv
        # log|det| lane contribution: (log|1+lmbd*w0| - log|1+lmbd*slope*w0|) where positive;
        # the constant negative-branch sum is added host-side.
        ld_lane = ld_lane + jnp.where(pos, ld_delta_ref[l], 0.0)

    z_ref[...] = cur
    if seg_ref.shape[1] == 1:                            # unpacked (dim >= 128): plain row sum
        ld_ref[...] = jnp.sum(ld_lane, axis=1, keepdims=True)
    else:                                                # packed: segmented sum on the idle MXU
        ld_ref[...] = jnp.dot(ld_lane, seg_ref[...], preferred_element_type=jnp.float32)


def _ceil_to(v, m):
    return (v + m - 1) // m * m


def cnn_flow_forward(x, packed):
    (wvec, lmbd_p, lmbd_n, ld_delta, seg, bias,
     dilations, dim, P, W, ld_base) = packed
    bs, d = x.shape
    assert d == dim
    L, k = int(wvec.shape[0]), int(wvec.shape[1])

    # ---- batch-row tiling (P samples packed per row of width W = P*dim) ----
    rows = pl.cdiv(bs, P)
    if rows <= 8:
        tile_rows = _ceil_to(rows, 8)
    else:
        # >= 2 grid steps whenever possible (v7x has 2 TCs; "parallel" shards the grid),
        # tile capped at 128 rows (VPU-bound elementwise kernel; larger tiles only add spill risk)
        tile_rows = min(128, _ceil_to(pl.cdiv(_ceil_to(rows, 8), 2), 8))
    rows_p = _ceil_to(rows, tile_rows)
    grid = (rows_p // tile_rows,)

    x_packed = jnp.pad(x, ((0, rows_p * P - bs), (0, 0))).reshape(rows_p, W)

    # ---- VMEM budget estimate (declared buffers + unrolled live temporaries), capped for v7x ----
    lane_w = _ceil_to(W, 128)
    bytes_est = 4 * (
        2 * 2 * tile_rows * lane_w                   # x in + z out (double buffered)
        + 2 * tile_rows * 128                        # logdet output block
        + 2 * (L * (k + 3) * lane_w + lane_w * 128)  # resident param tables (double buffered)
        + 6 * tile_rows * lane_w                     # cur / conv / pos / ld_lane live values
    )
    vmem_limit = int(min(max(4 * bytes_est, 16 << 20), 48 << 20))

    kernel = functools.partial(_cnn_flow_kernel,
                               dilations=tuple(int(v) for v in dilations),
                               kernel_size=k, dim=int(dim))

    z_packed, ld_packed = pl.pallas_call(
        kernel,
        grid=grid,
        in_specs=[
            pl.BlockSpec((tile_rows, W), lambda i: (i, 0)),           # x (batch tiled)
            pl.BlockSpec((L, k, 1, W), lambda i: (0, 0, 0, 0)),       # masked tap weights
            pl.BlockSpec((L, 1, W), lambda i: (0, 0, 0)),             # lmbd      (h' = 1)
            pl.BlockSpec((L, 1, W), lambda i: (0, 0, 0)),             # slope*lmbd (h' = slope)
            pl.BlockSpec((L, 1, W), lambda i: (0, 0, 0)),             # logdet delta table
            pl.BlockSpec((W, P), lambda i: (0, 0)),                   # segment-sum matrix
            pl.BlockSpec(memory_space=pltpu.MemorySpace.SMEM),        # biases (L,), flat 1-D
        ],
        out_specs=(pl.BlockSpec((tile_rows, W), lambda i: (i, 0)),
                   pl.BlockSpec((tile_rows, P), lambda i: (i, 0))),
        out_shape=(jax.ShapeDtypeStruct((rows_p, W), jnp.float32),
                   jax.ShapeDtypeStruct((rows_p, P), jnp.float32)),
        compiler_params=pltpu.CompilerParams(
            dimension_semantics=("parallel",),
            vmem_limit_bytes=vmem_limit),
    )(x_packed, wvec, lmbd_p, lmbd_n, ld_delta, seg, bias)

    # CNN_Flow: z = output.mm(R), R anti-diagonal == per-sample feature reversal (cheap XLA op).
    z = z_packed.reshape(rows_p * P, dim)[:bs, ::-1]
    logdet = ld_packed.reshape(rows_p * P)[:bs] + ld_base
    return z, logdet


# --------------------------------------------------------------------- parameter setup
def block_dilations(dim):
    d, out = 1, []
    while d <= dim:          # Dilation_Block: dilation = 2**i while 2**i <= dim
        out.append(d)
        d *= 2
    return out


def init_cnn_flow_params(key, dim, cnn_layers, kernel_size):
    """Per-layer (conv weight (k,), bias (), lmbd (dim,), dilation) — deterministic."""
    bound = 1.0 / np.sqrt(kernel_size)   # PyTorch Conv1d(1,1,k) default init bound
    layers = []
    for _blk in range(cnn_layers):
        for dil in block_dilations(dim):
            key, k1, k2, k3 = jax.random.split(key, 4)
            w = jax.random.uniform(k1, (kernel_size,), jnp.float32, -bound, bound)
            b = jax.random.uniform(k2, (), jnp.float32, -bound, bound)
            lmbd = 0.1 * jax.random.normal(k3, (dim,), jnp.float32)
            layers.append((w, b, lmbd, dil))
    return layers


def pack_params(layers, dim, kernel_size):
    """Pack per-layer params into lane-dense per-lane tables (samples packed P per 128 lanes)."""
    L = len(layers)
    P = 128 // dim if (dim < 128 and 128 % dim == 0) else 1
    W = P * dim
    lane = np.arange(W)
    i_seg = lane % dim                        # position of each lane inside its sample segment

    wvec = np.zeros((L, kernel_size, 1, W), np.float32)
    lmbd_p = np.zeros((L, 1, W), np.float32)
    lmbd_n = np.zeros((L, 1, W), np.float32)
    ld_delta = np.zeros((L, 1, W), np.float32)
    bias = np.zeros((L,), np.float32)
    dilations = []
    ld_base = 0.0

    for l, (w, b, lmbd, dil) in enumerate(layers):
        w = np.asarray(w, np.float32)
        lmbd = np.asarray(lmbd, np.float32)
        bias[l] = float(np.asarray(b))
        dilations.append(int(dil))
        for j in range(kernel_size):
            in_range = (i_seg + j * dil) < dim      # right zero padding + packing seam mask
            wvec[l, j, 0] = np.where(in_range, w[j], 0.0)
        lmbd_p[l, 0] = lmbd[i_seg]
        lmbd_n[l, 0] = NEG_SLOPE * lmbd[i_seg]
        # diag(J) = 1 + lmbd * w0 * h'(conv), h' in {1, NEG_SLOPE}.
        # NOTE: if a factor is exactly 0 the delta/base split below yields NaN where the exact
        # math gives -inf; this is a measure-zero event with random init (documented per review).
        ldp = np.log(np.abs(1.0 + lmbd * w[0]))
        ldn = np.log(np.abs(1.0 + lmbd * NEG_SLOPE * w[0]))
        ld_delta[l, 0] = (ldp - ldn)[i_seg]
        ld_base += float(np.sum(ldn))

    seg = (lane[:, None] // dim == np.arange(P)[None, :]).astype(np.float32)   # (W, P)

    return (jnp.asarray(wvec), jnp.asarray(lmbd_p), jnp.asarray(lmbd_n),
            jnp.asarray(ld_delta), jnp.asarray(seg), jnp.asarray(bias),
            tuple(dilations), int(dim), int(P), int(W), float(ld_base))


# ----------------------------------------------------------------------- JAX reference
def cnn_flow_reference(x, layers, dim, kernel_size):
    out = x
    logdet = jnp.zeros((x.shape[0],), jnp.float32)
    for (w, b, lmbd, dil) in layers:
        pad = (kernel_size - 1) * dil
        xp = jnp.pad(out, ((0, 0), (0, pad)))
        conv = b + sum(w[j] * xp[:, j * dil: j * dil + dim] for j in range(kernel_size))
        act = jnp.where(conv >= 0, conv, NEG_SLOPE * conv)
        grad = jnp.where(conv >= 0, 1.0, NEG_SLOPE)
        out = out + lmbd * act
        logdet = logdet + jnp.sum(jnp.log(jnp.abs(1.0 + lmbd * grad * w[0])), axis=1)
    z = out[:, ::-1]                      # output.mm(R) == column reversal
    return z, logdet


# ---------------------------------------------------------------------------------- main
if __name__ == "__main__":
    dim, cnn_layers, kernel_size = 16, 2, 3
    batch = 8

    key = jax.random.PRNGKey(0)
    key, kx = jax.random.split(key)
    x = jax.random.normal(kx, (batch, dim), jnp.float32)

    layers = init_cnn_flow_params(key, dim, cnn_layers, kernel_size)
    packed = pack_params(layers, dim, kernel_size)

    z, logdet = cnn_flow_forward(x, packed)
    jax.block_until_ready((z, logdet))

    z_ref, logdet_ref = cnn_flow_reference(x, layers, dim, kernel_size)
    np.testing.assert_allclose(np.asarray(z), np.asarray(z_ref), rtol=1e-5, atol=1e-5)
    np.testing.assert_allclose(np.asarray(logdet), np.asarray(logdet_ref),
                               rtol=1e-5, atol=1e-5)

    print("KERNEL_OK")
</pallas_src>

<mosaic_0001>
module attributes {stable_mosaic.version = 11 : i64} {
  func.func @_cnn_flow_kernel(%arg0: i32, %arg1: memref<8x128xf32, #tpu.memory_space<vmem>>, %arg2: memref<10x3x1x128xf32, #tpu.memory_space<vmem>>, %arg3: memref<10x1x128xf32, #tpu.memory_space<vmem>>, %arg4: memref<10x1x128xf32, #tpu.memory_space<vmem>>, %arg5: memref<10x1x128xf32, #tpu.memory_space<vmem>>, %arg6: memref<128x8xf32, #tpu.memory_space<vmem>>, %arg7: memref<10xf32, #tpu.memory_space<smem>>, %arg8: memref<8x128xf32, #tpu.memory_space<vmem>>, %arg9: memref<8x8xf32, #tpu.memory_space<vmem>>) attributes {dimension_semantics = [#tpu.dimension_semantics<parallel>], iteration_bounds = array<i64: 1>, scalar_prefetch = 0 : i64, scratch_operands = 0 : i64, tpu.core_type = #tpu.core_type<tc>, window_params = [{transform_indices = @transform_0, window_bounds = array<i64: 8, 128>}, {pipeline_mode = #tpu.pipeline_mode<synchronous>, transform_indices = @transform_1, window_bounds = array<i64: 10, 3, 1, 128>}, {pipeline_mode = #tpu.pipeline_mode<synchronous>, transform_indices = @transform_2, window_bounds = array<i64: 10, 1, 128>}, {pipeline_mode = #tpu.pipeline_mode<synchronous>, transform_indices = @transform_3, window_bounds = array<i64: 10, 1, 128>}, {pipeline_mode = #tpu.pipeline_mode<synchronous>, transform_indices = @transform_4, window_bounds = array<i64: 10, 1, 128>}, {pipeline_mode = #tpu.pipeline_mode<synchronous>, transform_indices = @transform_5, window_bounds = array<i64: 128, 8>}, {transform_indices = @transform_6, window_bounds = array<i64: 10>}, {transform_indices = @transform_7, window_bounds = array<i64: 8, 128>}, {transform_indices = @transform_8, window_bounds = array<i64: 8, 8>}]} {
    %c0 = arith.constant 0 : index
    %c0_0 = arith.constant 0 : index
    %0 = vector.load %arg1[%c0, %c0_0] : memref<8x128xf32, #tpu.memory_space<vmem>>, vector<8x128xf32>
    %cst = arith.constant 0.000000e+00 : f32
    %1 = vector.broadcast %cst : f32 to vector<8x128xf32>
    %c0_1 = arith.constant 0 : index
    %c0_2 = arith.constant 0 : index
    %c0_3 = arith.constant 0 : index
    %c0_4 = arith.constant 0 : index
    %2 = vector.load %arg2[%c0_1, %c0_2, %c0_3, %c0_4] : memref<10x3x1x128xf32, #tpu.memory_space<vmem>>, vector<1x1x1x128xf32>
    %3 = vector.shape_cast %2 : vector<1x1x1x128xf32> to vector<1x128xf32>
    %4 = vector.broadcast %3 : vector<1x128xf32> to vector<8x128xf32>
    %5 = arith.mulf %4, %0 : vector<8x128xf32>
    %c0_5 = arith.constant 0 : index
    %6 = memref.load %arg7[%c0_5] : memref<10xf32, #tpu.memory_space<smem>>
    %7 = vector.broadcast %6 : f32 to vector<8x128xf32>
    %8 = arith.addf %5, %7 : vector<8x128xf32>
    %c0_6 = arith.constant 0 : index
    %c1 = arith.constant 1 : index
    %c0_7 = arith.constant 0 : index
    %c0_8 = arith.constant 0 : index
    %9 = vector.load %arg2[%c0_6, %c1, %c0_7, %c0_8] : memref<10x3x1x128xf32, #tpu.memory_space<vmem>>, vector<1x1x1x128xf32>
    %10 = vector.shape_cast %9 : vector<1x1x1x128xf32> to vector<1x128xf32>
    %c127_i32 = arith.constant 127 : i32
    %11 = tpu.dynamic_rotate %0 by %c127_i32 dim 1 : vector<8x128xf32>, i32 -> vector<8x128xf32>
    %12 = vector.broadcast %10 : vector<1x128xf32> to vector<8x128xf32>
    %13 = arith.mulf %12, %11 : vector<8x128xf32>
    %14 = arith.addf %8, %13 : vector<8x128xf32>
    %c0_9 = arith.constant 0 : index
    %c2 = arith.constant 2 : index
    %c0_10 = arith.constant 0 : index
    %c0_11 = arith.constant 0 : index
    %15 = vector.load %arg2[%c0_9, %c2, %c0_10, %c0_11] : memref<10x3x1x128xf32, #tpu.memory_space<vmem>>, vector<1x1x1x128xf32>
    %16 = vector.shape_cast %15 : vector<1x1x1x128xf32> to vector<1x128xf32>
    %c126_i32 = arith.constant 126 : i32
    %17 = tpu.dynamic_rotate %0 by %c126_i32 dim 1 : vector<8x128xf32>, i32 -> vector<8x128xf32>
    %18 = vector.broadcast %16 : vector<1x128xf32> to vector<8x128xf32>
    %19 = arith.mulf %18, %17 : vector<8x128xf32>
    %20 = arith.addf %14, %19 : vector<8x128xf32>
    %cst_12 = arith.constant 0.000000e+00 : f32
    %21 = vector.broadcast %cst_12 : f32 to vector<8x128xf32>
    %22 = arith.cmpf oge, %20, %21 : vector<8x128xf32>
    %c0_13 = arith.constant 0 : index
    %c0_14 = arith.constant 0 : index
    %c0_15 = arith.constant 0 : index
    %23 = vector.load %arg3[%c0_13, %c0_14, %c0_15] : memref<10x1x128xf32, #tpu.memory_space<vmem>>, vector<1x1x128xf32>
    %24 = vector.shape_cast %23 : vector<1x1x128xf32> to vector<1x128xf32>
    %c0_16 = arith.constant 0 : index
    %c0_17 = arith.constant 0 : index
    %c0_18 = arith.constant 0 : index
    %25 = vector.load %arg4[%c0_16, %c0_17, %c0_18] : memref<10x1x128xf32, #tpu.memory_space<vmem>>, vector<1x1x128xf32>
    %26 = vector.shape_cast %25 : vector<1x1x128xf32> to vector<1x128xf32>
    %27 = vector.shape_cast %24 : vector<1x128xf32> to vector<1x128xf32>
    %28 = vector.broadcast %27 : vector<1x128xf32> to vector<8x128xf32>
    %29 = vector.shape_cast %26 : vector<1x128xf32> to vector<1x128xf32>
    %30 = vector.broadcast %29 : vector<1x128xf32> to vector<8x128xf32>
    %31 = arith.select %22, %28, %30 : vector<8x128xi1>, vector<8x128xf32>
    %32 = arith.mulf %31, %20 : vector<8x128xf32>
    %33 = arith.addf %0, %32 : vector<8x128xf32>
    %c0_19 = arith.constant 0 : index
    %c0_20 = arith.constant 0 : index
    %c0_21 = arith.constant 0 : index
    %34 = vector.load %arg5[%c0_19, %c0_20, %c0_21] : memref<10x1x128xf32, #tpu.memory_space<vmem>>, vector<1x1x128xf32>
    %35 = vector.shape_cast %34 : vector<1x1x128xf32> to vector<1x128xf32>
    %cst_22 = arith.constant 0.000000e+00 : f32
    %36 = vector.shape_cast %35 : vector<1x128xf32> to vector<1x128xf32>
    %37 = vector.broadcast %36 : vector<1x128xf32> to vector<8x128xf32>
    %38 = vector.broadcast %cst_22 : f32 to vector<8x128xf32>
    %39 = arith.select %22, %37, %38 : vector<8x128xi1>, vector<8x128xf32>
    %40 = arith.addf %1, %39 : vector<8x128xf32>
    %c1_23 = arith.constant 1 : index
    %c0_24 = arith.constant 0 : index
    %c0_25 = arith.constant 0 : index
    %c0_26 = arith.constant 0 : index
    %41 = vector.load %arg2[%c1_23, %c0_24, %c0_25, %c0_26] : memref<10x3x1x128xf32, #tpu.memory_space<vmem>>, vector<1x1x1x128xf32>
    %42 = vector.shape_cast %41 : vector<1x1x1x128xf32> to vector<1x128xf32>
    %43 = vector.broadcast %42 : vector<1x128xf32> to vector<8x128xf32>
    %44 = arith.mulf %43, %33 : vector<8x128xf32>
    %c1_27 = arith.constant 1 : index
    %45 = memref.load %arg7[%c1_27] : memref<10xf32, #tpu.memory_space<smem>>
    %46 = vector.broadcast %45 : f32 to vector<8x128xf32>
    %47 = arith.addf %44, %46 : vector<8x128xf32>
    %c1_28 = arith.constant 1 : index
    %c1_29 = arith.constant 1 : index
    %c0_30 = arith.constant 0 : index
    %c0_31 = arith.constant 0 : index
    %48 = vector.load %arg2[%c1_28, %c1_29, %c0_30, %c0_31] : memref<10x3x1x128xf32, #tpu.memory_space<vmem>>, vector<1x1x1x128xf32>
    %49 = vector.shape_cast %48 : vector<1x1x1x128xf32> to vector<1x128xf32>
    %c126_i32_32 = arith.constant 126 : i32
    %50 = tpu.dynamic_rotate %33 by %c126_i32_32 dim 1 : vector<8x128xf32>, i32 -> vector<8x128xf32>
    %51 = vector.broadcast %49 : vector<1x128xf32> to vector<8x128xf32>
    %52 = arith.mulf %51, %50 : vector<8x128xf32>
    %53 = arith.addf %47, %52 : vector<8x128xf32>
    %c1_33 = arith.constant 1 : index
    %c2_34 = arith.constant 2 : index
    %c0_35 = arith.constant 0 : index
    %c0_36 = arith.constant 0 : index
    %54 = vector.load %arg2[%c1_33, %c2_34, %c0_35, %c0_36] : memref<10x3x1x128xf32, #tpu.memory_space<vmem>>, vector<1x1x1x128xf32>
    %55 = vector.shape_cast %54 : vector<1x1x1x128xf32> to vector<1x128xf32>
    %c124_i32 = arith.constant 124 : i32
    %56 = tpu.dynamic_rotate %33 by %c124_i32 dim 1 : vector<8x128xf32>, i32 -> vector<8x128xf32>
    %57 = vector.broadcast %55 : vector<1x128xf32> to vector<8x128xf32>
    %58 = arith.mulf %57, %56 : vector<8x128xf32>
    %59 = arith.addf %53, %58 : vector<8x128xf32>
    %cst_37 = arith.constant 0.000000e+00 : f32
    %60 = vector.broadcast %cst_37 : f32 to vector<8x128xf32>
    %61 = arith.cmpf oge, %59, %60 : vector<8x128xf32>
    %c1_38 = arith.constant 1 : index
    %c0_39 = arith.constant 0 : index
    %c0_40 = arith.constant 0 : index
    %62 = vector.load %arg3[%c1_38, %c0_39, %c0_40] : memref<10x1x128xf32, #tpu.memory_space<vmem>>, vector<1x1x128xf32>
    %63 = vector.shape_cast %62 : vector<1x1x128xf32> to vector<1x128xf32>
    %c1_41 = arith.constant 1 : index
    %c0_42 = arith.constant 0 : index
    %c0_43 = arith.constant 0 : index
    %64 = vector.load %arg4[%c1_41, %c0_42, %c0_43] : memref<10x1x128xf32, #tpu.memory_space<vmem>>, vector<1x1x128xf32>
    %65 = vector.shape_cast %64 : vector<1x1x128xf32> to vector<1x128xf32>
    %66 = vector.shape_cast %63 : vector<1x128xf32> to vector<1x128xf32>
    %67 = vector.broadcast %66 : vector<1x128xf32> to vector<8x128xf32>
    %68 = vector.shape_cast %65 : vector<1x128xf32> to vector<1x128xf32>
    %69 = vector.broadcast %68 : vector<1x128xf32> to vector<8x128xf32>
    %70 = arith.select %61, %67, %69 : vector<8x128xi1>, vector<8x128xf32>
    %71 = arith.mulf %70, %59 : vector<8x128xf32>
    %72 = arith.addf %33, %71 : vector<8x128xf32>
    %c1_44 = arith.constant 1 : index
    %c0_45 = arith.constant 0 : index
    %c0_46 = arith.constant 0 : index
    %73 = vector.load %arg5[%c1_44, %c0_45, %c0_46] : memref<10x1x128xf32, #tpu.memory_space<vmem>>, vector<1x1x128xf32>
    %74 = vector.shape_cast %73 : vector<1x1x128xf32> to vector<1x128xf32>
    %cst_47 = arith.constant 0.000000e+00 : f32
    %75 = vector.shape_cast %74 : vector<1x128xf32> to vector<1x128xf32>
    %76 = vector.broadcast %75 : vector<1x128xf32> to vector<8x128xf32>
    %77 = vector.broadcast %cst_47 : f32 to vector<8x128xf32>
    %78 = arith.select %61, %76, %77 : vector<8x128xi1>, vector<8x128xf32>
    %79 = arith.addf %40, %78 : vector<8x128xf32>
    %c2_48 = arith.constant 2 : index
    %c0_49 = arith.constant 0 : index
    %c0_50 = arith.constant 0 : index
    %c0_51 = arith.constant 0 : index
    %80 = vector.load %arg2[%c2_48, %c0_49, %c0_50, %c0_51] : memref<10x3x1x128xf32, #tpu.memory_space<vmem>>, vector<1x1x1x128xf32>
    %81 = vector.shape_cast %80 : vector<1x1x1x128xf32> to vector<1x128xf32>
    %82 = vector.broadcast %81 : vector<1x128xf32> to vector<8x128xf32>
    %83 = arith.mulf %82, %72 : vector<8x128xf32>
    %c2_52 = arith.constant 2 : index
    %84 = memref.load %arg7[%c2_52] : memref<10xf32, #tpu.memory_space<smem>>
    %85 = vector.broadcast %84 : f32 to vector<8x128xf32>
    %86 = arith.addf %83, %85 : vector<8x128xf32>
    %c2_53 = arith.constant 2 : index
    %c1_54 = arith.constant 1 : index
    %c0_55 = arith.constant 0 : index
    %c0_56 = arith.constant 0 : index
    %87 = vector.load %arg2[%c2_53, %c1_54, %c0_55, %c0_56] : memref<10x3x1x128xf32, #tpu.memory_space<vmem>>, vector<1x1x1x128xf32>
    %88 = vector.shape_cast %87 : vector<1x1x1x128xf32> to vector<1x128xf32>
    %c124_i32_57 = arith.constant 124 : i32
    %89 = tpu.dynamic_rotate %72 by %c124_i32_57 dim 1 : vector<8x128xf32>, i32 -> vector<8x128xf32>
    %90 = vector.broadcast %88 : vector<1x128xf32> to vector<8x128xf32>
    %91 = arith.mulf %90, %89 : vector<8x128xf32>
    %92 = arith.addf %86, %91 : vector<8x128xf32>
    %c2_58 = arith.constant 2 : index
    %c2_59 = arith.constant 2 : index
    %c0_60 = arith.constant 0 : index
    %c0_61 = arith.constant 0 : index
    %93 = vector.load %arg2[%c2_58, %c2_59, %c0_60, %c0_61] : memref<10x3x1x128xf32, #tpu.memory_space<vmem>>, vector<1x1x1x128xf32>
    %94 = vector.shape_cast %93 : vector<1x1x1x128xf32> to vector<1x128xf32>
    %c120_i32 = arith.constant 120 : i32
    %95 = tpu.dynamic_rotate %72 by %c120_i32 dim 1 : vector<8x128xf32>, i32 -> vector<8x128xf32>
    %96 = vector.broadcast %94 : vector<1x128xf32> to vector<8x128xf32>
    %97 = arith.mulf %96, %95 : vector<8x128xf32>
    %98 = arith.addf %92, %97 : vector<8x128xf32>
    %cst_62 = arith.constant 0.000000e+00 : f32
    %99 = vector.broadcast %cst_62 : f32 to vector<8x128xf32>
    %100 = arith.cmpf oge, %98, %99 : vector<8x128xf32>
    %c2_63 = arith.constant 2 : index
    %c0_64 = arith.constant 0 : index
    %c0_65 = arith.constant 0 : index
    %101 = vector.load %arg3[%c2_63, %c0_64, %c0_65] : memref<10x1x128xf32, #tpu.memory_space<vmem>>, vector<1x1x128xf32>
    %102 = vector.shape_cast %101 : vector<1x1x128xf32> to vector<1x128xf32>
    %c2_66 = arith.constant 2 : index
    %c0_67 = arith.constant 0 : index
    %c0_68 = arith.constant 0 : index
    %103 = vector.load %arg4[%c2_66, %c0_67, %c0_68] : memref<10x1x128xf32, #tpu.memory_space<vmem>>, vector<1x1x128xf32>
    %104 = vector.shape_cast %103 : vector<1x1x128xf32> to vector<1x128xf32>
    %105 = vector.shape_cast %102 : vector<1x128xf32> to vector<1x128xf32>
    %106 = vector.broadcast %105 : vector<1x128xf32> to vector<8x128xf32>
    %107 = vector.shape_cast %104 : vector<1x128xf32> to vector<1x128xf32>
    %108 = vector.broadcast %107 : vector<1x128xf32> to vector<8x128xf32>
    %109 = arith.select %100, %106, %108 : vector<8x128xi1>, vector<8x128xf32>
    %110 = arith.mulf %109, %98 : vector<8x128xf32>
    %111 = arith.addf %72, %110 : vector<8x128xf32>
    %c2_69 = arith.constant 2 : index
    %c0_70 = arith.constant 0 : index
    %c0_71 = arith.constant 0 : index
    %112 = vector.load %arg5[%c2_69, %c0_70, %c0_71] : memref<10x1x128xf32, #tpu.memory_space<vmem>>, vector<1x1x128xf32>
    %113 = vector.shape_cast %112 : vector<1x1x128xf32> to vector<1x128xf32>
    %cst_72 = arith.constant 0.000000e+00 : f32
    %114 = vector.shape_cast %113 : vector<1x128xf32> to vector<1x128xf32>
    %115 = vector.broadcast %114 : vector<1x128xf32> to vector<8x128xf32>
    %116 = vector.broadcast %cst_72 : f32 to vector<8x128xf32>
    %117 = arith.select %100, %115, %116 : vector<8x128xi1>, vector<8x128xf32>
    %118 = arith.addf %79, %117 : vector<8x128xf32>
    %c3 = arith.constant 3 : index
    %c0_73 = arith.constant 0 : index
    %c0_74 = arith.constant 0 : index
    %c0_75 = arith.constant 0 : index
    %119 = vector.load %arg2[%c3, %c0_73, %c0_74, %c0_75] : memref<10x3x1x128xf32, #tpu.memory_space<vmem>>, vector<1x1x1x128xf32>
    %120 = vector.shape_cast %119 : vector<1x1x1x128xf32> to vector<1x128xf32>
    %121 = vector.broadcast %120 : vector<1x128xf32> to vector<8x128xf32>
    %122 = arith.mulf %121, %111 : vector<8x128xf32>
    %c3_76 = arith.constant 3 : index
    %123 = memref.load %arg7[%c3_76] : memref<10xf32, #tpu.memory_space<smem>>
    %124 = vector.broadcast %123 : f32 to vector<8x128xf32>
    %125 = arith.addf %122, %124 : vector<8x128xf32>
    %c3_77 = arith.constant 3 : index
    %c1_78 = arith.constant 1 : index
    %c0_79 = arith.constant 0 : index
    %c0_80 = arith.constant 0 : index
    %126 = vector.load %arg2[%c3_77, %c1_78, %c0_79, %c0_80] : memref<10x3x1x128xf32, #tpu.memory_space<vmem>>, vector<1x1x1x128xf32>
    %127 = vector.shape_cast %126 : vector<1x1x1x128xf32> to vector<1x128xf32>
    %c120_i32_81 = arith.constant 120 : i32
    %128 = tpu.dynamic_rotate %111 by %c120_i32_81 dim 1 : vector<8x128xf32>, i32 -> vector<8x128xf32>
    %129 = vector.broadcast %127 : vector<1x128xf32> to vector<8x128xf32>
    %130 = arith.mulf %129, %128 : vector<8x128xf32>
    %131 = arith.addf %125, %130 : vector<8x128xf32>
    %cst_82 = arith.constant 0.000000e+00 : f32
    %132 = vector.broadcast %cst_82 : f32 to vector<8x128xf32>
    %133 = arith.cmpf oge, %131, %132 : vector<8x128xf32>
    %c3_83 = arith.constant 3 : index
    %c0_84 = arith.constant 0 : index
    %c0_85 = arith.constant 0 : index
    %134 = vector.load %arg3[%c3_83, %c0_84, %c0_85] : memref<10x1x128xf32, #tpu.memory_space<vmem>>, vector<1x1x128xf32>
    %135 = vector.shape_cast %134 : vector<1x1x128xf32> to vector<1x128xf32>
    %c3_86 = arith.constant 3 : index
    %c0_87 = arith.constant 0 : index
    %c0_88 = arith.constant 0 : index
    %136 = vector.load %arg4[%c3_86, %c0_87, %c0_88] : memref<10x1x128xf32, #tpu.memory_space<vmem>>, vector<1x1x128xf32>
    %137 = vector.shape_cast %136 : vector<1x1x128xf32> to vector<1x128xf32>
    %138 = vector.shape_cast %135 : vector<1x128xf32> to vector<1x128xf32>
    %139 = vector.broadcast %138 : vector<1x128xf32> to vector<8x128xf32>
    %140 = vector.shape_cast %137 : vector<1x128xf32> to vector<1x128xf32>
    %141 = vector.broadcast %140 : vector<1x128xf32> to vector<8x128xf32>
    %142 = arith.select %133, %139, %141 : vector<8x128xi1>, vector<8x128xf32>
    %143 = arith.mulf %142, %131 : vector<8x128xf32>
    %144 = arith.addf %111, %143 : vector<8x128xf32>
    %c3_89 = arith.constant 3 : index
    %c0_90 = arith.constant 0 : index
    %c0_91 = arith.constant 0 : index
    %145 = vector.load %arg5[%c3_89, %c0_90, %c0_91] : memref<10x1x128xf32, #tpu.memory_space<vmem>>, vector<1x1x128xf32>
    %146 = vector.shape_cast %145 : vector<1x1x128xf32> to vector<1x128xf32>
    %cst_92 = arith.constant 0.000000e+00 : f32
    %147 = vector.shape_cast %146 : vector<1x128xf32> to vector<1x128xf32>
    %148 = vector.broadcast %147 : vector<1x128xf32> to vector<8x128xf32>
    %149 = vector.broadcast %cst_92 : f32 to vector<8x128xf32>
    %150 = arith.select %133, %148, %149 : vector<8x128xi1>, vector<8x128xf32>
    %151 = arith.addf %118, %150 : vector<8x128xf32>
    %c4 = arith.constant 4 : index
    %c0_93 = arith.constant 0 : index
    %c0_94 = arith.constant 0 : index
    %c0_95 = arith.constant 0 : index
    %152 = vector.load %arg2[%c4, %c0_93, %c0_94, %c0_95] : memref<10x3x1x128xf32, #tpu.memory_space<vmem>>, vector<1x1x1x128xf32>
    %153 = vector.shape_cast %152 : vector<1x1x1x128xf32> to vector<1x128xf32>
    %154 = vector.broadcast %153 : vector<1x128xf32> to vector<8x128xf32>
    %155 = arith.mulf %154, %144 : vector<8x128xf32>
    %c4_96 = arith.constant 4 : index
    %156 = memref.load %arg7[%c4_96] : memref<10xf32, #tpu.memory_space<smem>>
    %157 = vector.broadcast %156 : f32 to vector<8x128xf32>
    %158 = arith.addf %155, %157 : vector<8x128xf32>
    %cst_97 = arith.constant 0.000000e+00 : f32
    %159 = vector.broadcast %cst_97 : f32 to vector<8x128xf32>
    %160 = arith.cmpf oge, %158, %159 : vector<8x128xf32>
    %c4_98 = arith.constant 4 : index
    %c0_99 = arith.constant 0 : index
    %c0_100 = arith.constant 0 : index
    %161 = vector.load %arg3[%c4_98, %c0_99, %c0_100] : memref<10x1x128xf32, #tpu.memory_space<vmem>>, vector<1x1x128xf32>
    %162 = vector.shape_cast %161 : vector<1x1x128xf32> to vector<1x128xf32>
    %c4_101 = arith.constant 4 : index
    %c0_102 = arith.constant 0 : index
    %c0_103 = arith.constant 0 : index
    %163 = vector.load %arg4[%c4_101, %c0_102, %c0_103] : memref<10x1x128xf32, #tpu.memory_space<vmem>>, vector<1x1x128xf32>
    %164 = vector.shape_cast %163 : vector<1x1x128xf32> to vector<1x128xf32>
    %165 = vector.shape_cast %162 : vector<1x128xf32> to vector<1x128xf32>
    %166 = vector.broadcast %165 : vector<1x128xf32> to vector<8x128xf32>
    %167 = vector.shape_cast %164 : vector<1x128xf32> to vector<1x128xf32>
    %168 = vector.broadcast %167 : vector<1x128xf32> to vector<8x128xf32>
    %169 = arith.select %160, %166, %168 : vector<8x128xi1>, vector<8x128xf32>
    %170 = arith.mulf %169, %158 : vector<8x128xf32>
    %171 = arith.addf %144, %170 : vector<8x128xf32>
    %c4_104 = arith.constant 4 : index
    %c0_105 = arith.constant 0 : index
    %c0_106 = arith.constant 0 : index
    %172 = vector.load %arg5[%c4_104, %c0_105, %c0_106] : memref<10x1x128xf32, #tpu.memory_space<vmem>>, vector<1x1x128xf32>
    %173 = vector.shape_cast %172 : vector<1x1x128xf32> to vector<1x128xf32>
    %cst_107 = arith.constant 0.000000e+00 : f32
    %174 = vector.shape_cast %173 : vector<1x128xf32> to vector<1x128xf32>
    %175 = vector.broadcast %174 : vector<1x128xf32> to vector<8x128xf32>
    %176 = vector.broadcast %cst_107 : f32 to vector<8x128xf32>
    %177 = arith.select %160, %175, %176 : vector<8x128xi1>, vector<8x128xf32>
    %178 = arith.addf %151, %177 : vector<8x128xf32>
    %c5 = arith.constant 5 : index
    %c0_108 = arith.constant 0 : index
    %c0_109 = arith.constant 0 : index
    %c0_110 = arith.constant 0 : index
    %179 = vector.load %arg2[%c5, %c0_108, %c0_109, %c0_110] : memref<10x3x1x128xf32, #tpu.memory_space<vmem>>, vector<1x1x1x128xf32>
    %180 = vector.shape_cast %179 : vector<1x1x1x128xf32> to vector<1x128xf32>
    %181 = vector.broadcast %180 : vector<1x128xf32> to vector<8x128xf32>
    %182 = arith.mulf %181, %171 : vector<8x128xf32>
    %c5_111 = arith.constant 5 : index
    %183 = memref.load %arg7[%c5_111] : memref<10xf32, #tpu.memory_space<smem>>
    %184 = vector.broadcast %183 : f32 to vector<8x128xf32>
    %185 = arith.addf %182, %184 : vector<8x128xf32>
    %c5_112 = arith.constant 5 : index
    %c1_113 = arith.constant 1 : index
    %c0_114 = arith.constant 0 : index
    %c0_115 = arith.constant 0 : index
    %186 = vector.load %arg2[%c5_112, %c1_113, %c0_114, %c0_115] : memref<10x3x1x128xf32, #tpu.memory_space<vmem>>, vector<1x1x1x128xf32>
    %187 = vector.shape_cast %186 : vector<1x1x1x128xf32> to vector<1x128xf32>
    %c127_i32_116 = arith.constant 127 : i32
    %188 = tpu.dynamic_rotate %171 by %c127_i32_116 dim 1 : vector<8x128xf32>, i32 -> vector<8x128xf32>
    %189 = vector.broadcast %187 : vector<1x128xf32> to vector<8x128xf32>
    %190 = arith.mulf %189, %188 : vector<8x128xf32>
    %191 = arith.addf %185, %190 : vector<8x128xf32>
    %c5_117 = arith.constant 5 : index
    %c2_118 = arith.constant 2 : index
    %c0_119 = arith.constant 0 : index
    %c0_120 = arith.constant 0 : index
    %192 = vector.load %arg2[%c5_117, %c2_118, %c0_119, %c0_120] : memref<10x3x1x128xf32, #tpu.memory_space<vmem>>, vector<1x1x1x128xf32>
    %193 = vector.shape_cast %192 : vector<1x1x1x128xf32> to vector<1x128xf32>
    %c126_i32_121 = arith.constant 126 : i32
    %194 = tpu.dynamic_rotate %171 by %c126_i32_121 dim 1 : vector<8x128xf32>, i32 -> vector<8x128xf32>
    %195 = vector.broadcast %193 : vector<1x128xf32> to vector<8x128xf32>
    %196 = arith.mulf %195, %194 : vector<8x128xf32>
    %197 = arith.addf %191, %196 : vector<8x128xf32>
    %cst_122 = arith.constant 0.000000e+00 : f32
    %198 = vector.broadcast %cst_122 : f32 to vector<8x128xf32>
    %199 = arith.cmpf oge, %197, %198 : vector<8x128xf32>
    %c5_123 = arith.constant 5 : index
    %c0_124 = arith.constant 0 : index
    %c0_125 = arith.constant 0 : index
    %200 = vector.load %arg3[%c5_123, %c0_124, %c0_125] : memref<10x1x128xf32, #tpu.memory_space<vmem>>, vector<1x1x128xf32>
    %201 = vector.shape_cast %200 : vector<1x1x128xf32> to vector<1x128xf32>
    %c5_126 = arith.constant 5 : index
    %c0_127 = arith.constant 0 : index
    %c0_128 = arith.constant 0 : index
    %202 = vector.load %arg4[%c5_126, %c0_127, %c0_128] : memref<10x1x128xf32, #tpu.memory_space<vmem>>, vector<1x1x128xf32>
    %203 = vector.shape_cast %202 : vector<1x1x128xf32> to vector<1x128xf32>
    %204 = vector.shape_cast %201 : vector<1x128xf32> to vector<1x128xf32>
    %205 = vector.broadcast %204 : vector<1x128xf32> to vector<8x128xf32>
    %206 = vector.shape_cast %203 : vector<1x128xf32> to vector<1x128xf32>
    %207 = vector.broadcast %206 : vector<1x128xf32> to vector<8x128xf32>
    %208 = arith.select %199, %205, %207 : vector<8x128xi1>, vector<8x128xf32>
    %209 = arith.mulf %208, %197 : vector<8x128xf32>
    %210 = arith.addf %171, %209 : vector<8x128xf32>
    %c5_129 = arith.constant 5 : index
    %c0_130 = arith.constant 0 : index
    %c0_131 = arith.constant 0 : index
    %211 = vector.load %arg5[%c5_129, %c0_130, %c0_131] : memref<10x1x128xf32, #tpu.memory_space<vmem>>, vector<1x1x128xf32>
    %212 = vector.shape_cast %211 : vector<1x1x128xf32> to vector<1x128xf32>
    %cst_132 = arith.constant 0.000000e+00 : f32
    %213 = vector.shape_cast %212 : vector<1x128xf32> to vector<1x128xf32>
    %214 = vector.broadcast %213 : vector<1x128xf32> to vector<8x128xf32>
    %215 = vector.broadcast %cst_132 : f32 to vector<8x128xf32>
    %216 = arith.select %199, %214, %215 : vector<8x128xi1>, vector<8x128xf32>
    %217 = arith.addf %178, %216 : vector<8x128xf32>
    %c6 = arith.constant 6 : index
    %c0_133 = arith.constant 0 : index
    %c0_134 = arith.constant 0 : index
    %c0_135 = arith.constant 0 : index
    %218 = vector.load %arg2[%c6, %c0_133, %c0_134, %c0_135] : memref<10x3x1x128xf32, #tpu.memory_space<vmem>>, vector<1x1x1x128xf32>
    %219 = vector.shape_cast %218 : vector<1x1x1x128xf32> to vector<1x128xf32>
    %220 = vector.broadcast %219 : vector<1x128xf32> to vector<8x128xf32>
    %221 = arith.mulf %220, %210 : vector<8x128xf32>
    %c6_136 = arith.constant 6 : index
    %222 = memref.load %arg7[%c6_136] : memref<10xf32, #tpu.memory_space<smem>>
    %223 = vector.broadcast %222 : f32 to vector<8x128xf32>
    %224 = arith.addf %221, %223 : vector<8x128xf32>
    %c6_137 = arith.constant 6 : index
    %c1_138 = arith.constant 1 : index
    %c0_139 = arith.constant 0 : index
    %c0_140 = arith.constant 0 : index
    %225 = vector.load %arg2[%c6_137, %c1_138, %c0_139, %c0_140] : memref<10x3x1x128xf32, #tpu.memory_space<vmem>>, vector<1x1x1x128xf32>
    %226 = vector.shape_cast %225 : vector<1x1x1x128xf32> to vector<1x128xf32>
    %c126_i32_141 = arith.constant 126 : i32
    %227 = tpu.dynamic_rotate %210 by %c126_i32_141 dim 1 : vector<8x128xf32>, i32 -> vector<8x128xf32>
    %228 = vector.broadcast %226 : vector<1x128xf32> to vector<8x128xf32>
    %229 = arith.mulf %228, %227 : vector<8x128xf32>
    %230 = arith.addf %224, %229 : vector<8x128xf32>
    %c6_142 = arith.constant 6 : index
    %c2_143 = arith.constant 2 : index
    %c0_144 = arith.constant 0 : index
    %c0_145 = arith.constant 0 : index
    %231 = vector.load %arg2[%c6_142, %c2_143, %c0_144, %c0_145] : memref<10x3x1x128xf32, #tpu.memory_space<vmem>>, vector<1x1x1x128xf32>
    %232 = vector.shape_cast %231 : vector<1x1x1x128xf32> to vector<1x128xf32>
    %c124_i32_146 = arith.constant 124 : i32
    %233 = tpu.dynamic_rotate %210 by %c124_i32_146 dim 1 : vector<8x128xf32>, i32 -> vector<8x128xf32>
    %234 = vector.broadcast %232 : vector<1x128xf32> to vector<8x128xf32>
    %235 = arith.mulf %234, %233 : vector<8x128xf32>
    %236 = arith.addf %230, %235 : vector<8x128xf32>
    %cst_147 = arith.constant 0.000000e+00 : f32
    %237 = vector.broadcast %cst_147 : f32 to vector<8x128xf32>
    %238 = arith.cmpf oge, %236, %237 : vector<8x128xf32>
    %c6_148 = arith.constant 6 : index
    %c0_149 = arith.constant 0 : index
    %c0_150 = arith.constant 0 : index
    %239 = vector.load %arg3[%c6_148, %c0_149, %c0_150] : memref<10x1x128xf32, #tpu.memory_space<vmem>>, vector<1x1x128xf32>
    %240 = vector.shape_cast %239 : vector<1x1x128xf32> to vector<1x128xf32>
    %c6_151 = arith.constant 6 : index
    %c0_152 = arith.constant 0 : index
    %c0_153 = arith.constant 0 : index
    %241 = vector.load %arg4[%c6_151, %c0_152, %c0_153] : memref<10x1x128xf32, #tpu.memory_space<vmem>>, vector<1x1x128xf32>
    %242 = vector.shape_cast %241 : vector<1x1x128xf32> to vector<1x128xf32>
    %243 = vector.shape_cast %240 : vector<1x128xf32> to vector<1x128xf32>
    %244 = vector.broadcast %243 : vector<1x128xf32> to vector<8x128xf32>
    %245 = vector.shape_cast %242 : vector<1x128xf32> to vector<1x128xf32>
    %246 = vector.broadcast %245 : vector<1x128xf32> to vector<8x128xf32>
    %247 = arith.select %238, %244, %246 : vector<8x128xi1>, vector<8x128xf32>
    %248 = arith.mulf %247, %236 : vector<8x128xf32>
    %249 = arith.addf %210, %248 : vector<8x128xf32>
    %c6_154 = arith.constant 6 : index
    %c0_155 = arith.constant 0 : index
    %c0_156 = arith.constant 0 : index
    %250 = vector.load %arg5[%c6_154, %c0_155, %c0_156] : memref<10x1x128xf32, #tpu.memory_space<vmem>>, vector<1x1x128xf32>
    %251 = vector.shape_cast %250 : vector<1x1x128xf32> to vector<1x128xf32>
    %cst_157 = arith.constant 0.000000e+00 : f32
    %252 = vector.shape_cast %251 : vector<1x128xf32> to vector<1x128xf32>
    %253 = vector.broadcast %252 : vector<1x128xf32> to vector<8x128xf32>
    %254 = vector.broadcast %cst_157 : f32 to vector<8x128xf32>
    %255 = arith.select %238, %253, %254 : vector<8x128xi1>, vector<8x128xf32>
    %256 = arith.addf %217, %255 : vector<8x128xf32>
    %c7 = arith.constant 7 : index
    %c0_158 = arith.constant 0 : index
    %c0_159 = arith.constant 0 : index
    %c0_160 = arith.constant 0 : index
    %257 = vector.load %arg2[%c7, %c0_158, %c0_159, %c0_160] : memref<10x3x1x128xf32, #tpu.memory_space<vmem>>, vector<1x1x1x128xf32>
    %258 = vector.shape_cast %257 : vector<1x1x1x128xf32> to vector<1x128xf32>
    %259 = vector.broadcast %258 : vector<1x128xf32> to vector<8x128xf32>
    %260 = arith.mulf %259, %249 : vector<8x128xf32>
    %c7_161 = arith.constant 7 : index
    %261 = memref.load %arg7[%c7_161] : memref<10xf32, #tpu.memory_space<smem>>
    %262 = vector.broadcast %261 : f32 to vector<8x128xf32>
    %263 = arith.addf %260, %262 : vector<8x128xf32>
    %c7_162 = arith.constant 7 : index
    %c1_163 = arith.constant 1 : index
    %c0_164 = arith.constant 0 : index
    %c0_165 = arith.constant 0 : index
    %264 = vector.load %arg2[%c7_162, %c1_163, %c0_164, %c0_165] : memref<10x3x1x128xf32, #tpu.memory_space<vmem>>, vector<1x1x1x128xf32>
    %265 = vector.shape_cast %264 : vector<1x1x1x128xf32> to vector<1x128xf32>
    %c124_i32_166 = arith.constant 124 : i32
    %266 = tpu.dynamic_rotate %249 by %c124_i32_166 dim 1 : vector<8x128xf32>, i32 -> vector<8x128xf32>
    %267 = vector.broadcast %265 : vector<1x128xf32> to vector<8x128xf32>
    %268 = arith.mulf %267, %266 : vector<8x128xf32>
    %269 = arith.addf %263, %268 : vector<8x128xf32>
    %c7_167 = arith.constant 7 : index
    %c2_168 = arith.constant 2 : index
    %c0_169 = arith.constant 0 : index
    %c0_170 = arith.constant 0 : index
    %270 = vector.load %arg2[%c7_167, %c2_168, %c0_169, %c0_170] : memref<10x3x1x128xf32, #tpu.memory_space<vmem>>, vector<1x1x1x128xf32>
    %271 = vector.shape_cast %270 : vector<1x1x1x128xf32> to vector<1x128xf32>
    %c120_i32_171 = arith.constant 120 : i32
    %272 = tpu.dynamic_rotate %249 by %c120_i32_171 dim 1 : vector<8x128xf32>, i32 -> vector<8x128xf32>
    %273 = vector.broadcast %271 : vector<1x128xf32> to vector<8x128xf32>
    %274 = arith.mulf %273, %272 : vector<8x128xf32>
    %275 = arith.addf %269, %274 : vector<8x128xf32>
    %cst_172 = arith.constant 0.000000e+00 : f32
    %276 = vector.broadcast %cst_172 : f32 to vector<8x128xf32>
    %277 = arith.cmpf oge, %275, %276 : vector<8x128xf32>
    %c7_173 = arith.constant 7 : index
    %c0_174 = arith.constant 0 : index
    %c0_175 = arith.constant 0 : index
    %278 = vector.load %arg3[%c7_173, %c0_174, %c0_175] : memref<10x1x128xf32, #tpu.memory_space<vmem>>, vector<1x1x128xf32>
    %279 = vector.shape_cast %278 : vector<1x1x128xf32> to vector<1x128xf32>
    %c7_176 = arith.constant 7 : index
    %c0_177 = arith.constant 0 : index
    %c0_178 = arith.constant 0 : index
    %280 = vector.load %arg4[%c7_176, %c0_177, %c0_178] : memref<10x1x128xf32, #tpu.memory_space<vmem>>, vector<1x1x128xf32>
    %281 = vector.shape_cast %280 : vector<1x1x128xf32> to vector<1x128xf32>
    %282 = vector.shape_cast %279 : vector<1x128xf32> to vector<1x128xf32>
    %283 = vector.broadcast %282 : vector<1x128xf32> to vector<8x128xf32>
    %284 = vector.shape_cast %281 : vector<1x128xf32> to vector<1x128xf32>
    %285 = vector.broadcast %284 : vector<1x128xf32> to vector<8x128xf32>
    %286 = arith.select %277, %283, %285 : vector<8x128xi1>, vector<8x128xf32>
    %287 = arith.mulf %286, %275 : vector<8x128xf32>
    %288 = arith.addf %249, %287 : vector<8x128xf32>
    %c7_179 = arith.constant 7 : index
    %c0_180 = arith.constant 0 : index
    %c0_181 = arith.constant 0 : index
    %289 = vector.load %arg5[%c7_179, %c0_180, %c0_181] : memref<10x1x128xf32, #tpu.memory_space<vmem>>, vector<1x1x128xf32>
    %290 = vector.shape_cast %289 : vector<1x1x128xf32> to vector<1x128xf32>
    %cst_182 = arith.constant 0.000000e+00 : f32
    %291 = vector.shape_cast %290 : vector<1x128xf32> to vector<1x128xf32>
    %292 = vector.broadcast %291 : vector<1x128xf32> to vector<8x128xf32>
    %293 = vector.broadcast %cst_182 : f32 to vector<8x128xf32>
    %294 = arith.select %277, %292, %293 : vector<8x128xi1>, vector<8x128xf32>
    %295 = arith.addf %256, %294 : vector<8x128xf32>
    %c8 = arith.constant 8 : index
    %c0_183 = arith.constant 0 : index
    %c0_184 = arith.constant 0 : index
    %c0_185 = arith.constant 0 : index
    %296 = vector.load %arg2[%c8, %c0_183, %c0_184, %c0_185] : memref<10x3x1x128xf32, #tpu.memory_space<vmem>>, vector<1x1x1x128xf32>
    %297 = vector.shape_cast %296 : vector<1x1x1x128xf32> to vector<1x128xf32>
    %298 = vector.broadcast %297 : vector<1x128xf32> to vector<8x128xf32>
    %299 = arith.mulf %298, %288 : vector<8x128xf32>
    %c8_186 = arith.constant 8 : index
    %300 = memref.load %arg7[%c8_186] : memref<10xf32, #tpu.memory_space<smem>>
    %301 = vector.broadcast %300 : f32 to vector<8x128xf32>
    %302 = arith.addf %299, %301 : vector<8x128xf32>
    %c8_187 = arith.constant 8 : index
    %c1_188 = arith.constant 1 : index
    %c0_189 = arith.constant 0 : index
    %c0_190 = arith.constant 0 : index
    %303 = vector.load %arg2[%c8_187, %c1_188, %c0_189, %c0_190] : memref<10x3x1x128xf32, #tpu.memory_space<vmem>>, vector<1x1x1x128xf32>
    %304 = vector.shape_cast %303 : vector<1x1x1x128xf32> to vector<1x128xf32>
    %c120_i32_191 = arith.constant 120 : i32
    %305 = tpu.dynamic_rotate %288 by %c120_i32_191 dim 1 : vector<8x128xf32>, i32 -> vector<8x128xf32>
    %306 = vector.broadcast %304 : vector<1x128xf32> to vector<8x128xf32>
    %307 = arith.mulf %306, %305 : vector<8x128xf32>
    %308 = arith.addf %302, %307 : vector<8x128xf32>
    %cst_192 = arith.constant 0.000000e+00 : f32
    %309 = vector.broadcast %cst_192 : f32 to vector<8x128xf32>
    %310 = arith.cmpf oge, %308, %309 : vector<8x128xf32>
    %c8_193 = arith.constant 8 : index
    %c0_194 = arith.constant 0 : index
    %c0_195 = arith.constant 0 : index
    %311 = vector.load %arg3[%c8_193, %c0_194, %c0_195] : memref<10x1x128xf32, #tpu.memory_space<vmem>>, vector<1x1x128xf32>
    %312 = vector.shape_cast %311 : vector<1x1x128xf32> to vector<1x128xf32>
    %c8_196 = arith.constant 8 : index
    %c0_197 = arith.constant 0 : index
    %c0_198 = arith.constant 0 : index
    %313 = vector.load %arg4[%c8_196, %c0_197, %c0_198] : memref<10x1x128xf32, #tpu.memory_space<vmem>>, vector<1x1x128xf32>
    %314 = vector.shape_cast %313 : vector<1x1x128xf32> to vector<1x128xf32>
    %315 = vector.shape_cast %312 : vector<1x128xf32> to vector<1x128xf32>
    %316 = vector.broadcast %315 : vector<1x128xf32> to vector<8x128xf32>
    %317 = vector.shape_cast %314 : vector<1x128xf32> to vector<1x128xf32>
    %318 = vector.broadcast %317 : vector<1x128xf32> to vector<8x128xf32>
    %319 = arith.select %310, %316, %318 : vector<8x128xi1>, vector<8x128xf32>
    %320 = arith.mulf %319, %308 : vector<8x128xf32>
    %321 = arith.addf %288, %320 : vector<8x128xf32>
    %c8_199 = arith.constant 8 : index
    %c0_200 = arith.constant 0 : index
    %c0_201 = arith.constant 0 : index
    %322 = vector.load %arg5[%c8_199, %c0_200, %c0_201] : memref<10x1x128xf32, #tpu.memory_space<vmem>>, vector<1x1x128xf32>
    %323 = vector.shape_cast %322 : vector<1x1x128xf32> to vector<1x128xf32>
    %cst_202 = arith.constant 0.000000e+00 : f32
    %324 = vector.shape_cast %323 : vector<1x128xf32> to vector<1x128xf32>
    %325 = vector.broadcast %324 : vector<1x128xf32> to vector<8x128xf32>
    %326 = vector.broadcast %cst_202 : f32 to vector<8x128xf32>
    %327 = arith.select %310, %325, %326 : vector<8x128xi1>, vector<8x128xf32>
    %328 = arith.addf %295, %327 : vector<8x128xf32>
    %c9 = arith.constant 9 : index
    %c0_203 = arith.constant 0 : index
    %c0_204 = arith.constant 0 : index
    %c0_205 = arith.constant 0 : index
    %329 = vector.load %arg2[%c9, %c0_203, %c0_204, %c0_205] : memref<10x3x1x128xf32, #tpu.memory_space<vmem>>, vector<1x1x1x128xf32>
    %330 = vector.shape_cast %329 : vector<1x1x1x128xf32> to vector<1x128xf32>
    %331 = vector.broadcast %330 : vector<1x128xf32> to vector<8x128xf32>
    %332 = arith.mulf %331, %321 : vector<8x128xf32>
    %c9_206 = arith.constant 9 : index
    %333 = memref.load %arg7[%c9_206] : memref<10xf32, #tpu.memory_space<smem>>
    %334 = vector.broadcast %333 : f32 to vector<8x128xf32>
    %335 = arith.addf %332, %334 : vector<8x128xf32>
    %cst_207 = arith.constant 0.000000e+00 : f32
    %336 = vector.broadcast %cst_207 : f32 to vector<8x128xf32>
    %337 = arith.cmpf oge, %335, %336 : vector<8x128xf32>
    %c9_208 = arith.constant 9 : index
    %c0_209 = arith.constant 0 : index
    %c0_210 = arith.constant 0 : index
    %338 = vector.load %arg3[%c9_208, %c0_209, %c0_210] : memref<10x1x128xf32, #tpu.memory_space<vmem>>, vector<1x1x128xf32>
    %339 = vector.shape_cast %338 : vector<1x1x128xf32> to vector<1x128xf32>
    %c9_211 = arith.constant 9 : index
    %c0_212 = arith.constant 0 : index
    %c0_213 = arith.constant 0 : index
    %340 = vector.load %arg4[%c9_211, %c0_212, %c0_213] : memref<10x1x128xf32, #tpu.memory_space<vmem>>, vector<1x1x128xf32>
    %341 = vector.shape_cast %340 : vector<1x1x128xf32> to vector<1x128xf32>
    %342 = vector.shape_cast %339 : vector<1x128xf32> to vector<1x128xf32>
    %343 = vector.broadcast %342 : vector<1x128xf32> to vector<8x128xf32>
    %344 = vector.shape_cast %341 : vector<1x128xf32> to vector<1x128xf32>
    %345 = vector.broadcast %344 : vector<1x128xf32> to vector<8x128xf32>
    %346 = arith.select %337, %343, %345 : vector<8x128xi1>, vector<8x128xf32>
    %347 = arith.mulf %346, %335 : vector<8x128xf32>
    %348 = arith.addf %321, %347 : vector<8x128xf32>
    %c9_214 = arith.constant 9 : index
    %c0_215 = arith.constant 0 : index
    %c0_216 = arith.constant 0 : index
    %349 = vector.load %arg5[%c9_214, %c0_215, %c0_216] : memref<10x1x128xf32, #tpu.memory_space<vmem>>, vector<1x1x128xf32>
    %350 = vector.shape_cast %349 : vector<1x1x128xf32> to vector<1x128xf32>
    %cst_217 = arith.constant 0.000000e+00 : f32
    %351 = vector.shape_cast %350 : vector<1x128xf32> to vector<1x128xf32>
    %352 = vector.broadcast %351 : vector<1x128xf32> to vector<8x128xf32>
    %353 = vector.broadcast %cst_217 : f32 to vector<8x128xf32>
    %354 = arith.select %337, %352, %353 : vector<8x128xi1>, vector<8x128xf32>
    %355 = arith.addf %328, %354 : vector<8x128xf32>
    %c0_218 = arith.constant 0 : index
    %c0_219 = arith.constant 0 : index
    %356 = vector.load %arg8[%c0_218, %c0_219] : memref<8x128xf32, #tpu.memory_space<vmem>>, vector<8x128xf32>
    tpu.vector_store %arg8[%c0_218, %c0_219], %348 {strides = array<i32>} : memref<8x128xf32, #tpu.memory_space<vmem>>, vector<8x128xf32>,
    %c0_220 = arith.constant 0 : index
    %c0_221 = arith.constant 0 : index
    %357 = vector.load %arg6[%c0_220, %c0_221] : memref<128x8xf32, #tpu.memory_space<vmem>>, vector<128x8xf32>
    %cst_222 = arith.constant dense<0.000000e+00> : vector<8x8xf32>
    %358 = tpu.matmul %355, %357, %cst_222 {dimension_numbers = #tpu.dot_dimension_numbers<[1], [0], [0], [1], [0, 0, 1, 1], [], []>} : vector<8x128xf32>, vector<128x8xf32>, vector<8x8xf32> -> vector<8x8xf32>
    %c0_223 = arith.constant 0 : index
    %c0_224 = arith.constant 0 : index
    %359 = vector.load %arg9[%c0_223, %c0_224] : memref<8x8xf32, #tpu.memory_space<vmem>>, vector<8x8xf32>
    tpu.vector_store %arg9[%c0_223, %c0_224], %358 {strides = array<i32>} : memref<8x8xf32, #tpu.memory_space<vmem>>, vector<8x8xf32>,
    return
  }
  func.func @transform_0(%arg0: i32) -> (i32, i32) {
    %c0_i32 = arith.constant 0 : i32
    %c0_i32_0 = arith.constant 0 : i32
    return %arg0, %c0_i32 : i32, i32
  }
  func.func @transform_1(%arg0: i32) -> (i32, i32, i32, i32) {
    %c0_i32 = arith.constant 0 : i32
    %c0_i32_0 = arith.constant 0 : i32
    %c0_i32_1 = arith.constant 0 : i32
    %c0_i32_2 = arith.constant 0 : i32
    %c0_i32_3 = arith.constant 0 : i32
    return %c0_i32, %c0_i32_0, %c0_i32_1, %c0_i32_2 : i32, i32, i32, i32
  }
  func.func @transform_2(%arg0: i32) -> (i32, i32, i32) {
    %c0_i32 = arith.constant 0 : i32
    %c0_i32_0 = arith.constant 0 : i32
    %c0_i32_1 = arith.constant 0 : i32
    %c0_i32_2 = arith.constant 0 : i32
    return %c0_i32, %c0_i32_0, %c0_i32_1 : i32, i32, i32
  }
  func.func @transform_3(%arg0: i32) -> (i32, i32, i32) {
    %c0_i32 = arith.constant 0 : i32
    %c0_i32_0 = arith.constant 0 : i32
    %c0_i32_1 = arith.constant 0 : i32
    %c0_i32_2 = arith.constant 0 : i32
    return %c0_i32, %c0_i32_0, %c0_i32_1 : i32, i32, i32
  }
  func.func @transform_4(%arg0: i32) -> (i32, i32, i32) {
    %c0_i32 = arith.constant 0 : i32
    %c0_i32_0 = arith.constant 0 : i32
    %c0_i32_1 = arith.constant 0 : i32
    %c0_i32_2 = arith.constant 0 : i32
    return %c0_i32, %c0_i32_0, %c0_i32_1 : i32, i32, i32
  }
  func.func @transform_5(%arg0: i32) -> (i32, i32) {
    %c0_i32 = arith.constant 0 : i32
    %c0_i32_0 = arith.constant 0 : i32
    %c0_i32_1 = arith.constant 0 : i32
    return %c0_i32, %c0_i32_0 : i32, i32
  }
  func.func @transform_6(%arg0: i32) -> i32 {
    %c0_i32 = arith.constant 0 : i32
    %c0_i32_0 = arith.constant 0 : i32
    return %c0_i32 : i32
  }
  func.func @transform_7(%arg0: i32) -> (i32, i32) {
    %c0_i32 = arith.constant 0 : i32
    %c0_i32_0 = arith.constant 0 : i32
    return %arg0, %c0_i32 : i32, i32
  }
  func.func @transform_8(%arg0: i32) -> (i32, i32) {
    %c0_i32 = arith.constant 0 : i32
    %c0_i32_0 = arith.constant 0 : i32
    return %arg0, %c0_i32 : i32, i32
  }
}

</mosaic_0001>

<bundles_post_ra>
// kernel: tpu_custom_call.1
= control target key start
LH: loop header
LB: loop body
LE: loop exit
PB: predicated region body
PF: predicated region fallthrough
CT: control target
= control target key end

     0   :  { %14 = vsyncpa [#allocation4], 0  ;;  %s1293_s0 = inlined_call_operand.vmem [shape: f32[8,128], index: 0, kind: input, shape index: {}]   ;;  %s1294_s1 = inlined_call_operand.vmem [shape: f32[10,3,1,128], index: 1, kind: input, shape index: {}]   ;;  %s1295_s2 = inlined_call_operand.vmem [shape: f32[10,1,128], index: 2, kind: input, shape index: {}]   ;;  %s1296_s3 = inlined_call_operand.vmem [shape: f32[10,1,128], index: 3, kind: input, shape index: {}]   ;;  %s1297_s4 = inlined_call_operand.vmem [shape: f32[10,1,128], index: 4, kind: input, shape index: {}]   ;;  %s1298_s5 = inlined_call_operand.vmem [shape: f32[128,8], index: 5, kind: input, shape index: {}]   ;;  %s1299_s6 = inlined_call_operand.vmem [shape: f32[10], index: 6, kind: input, shape index: {}]   ;;  %s1300_s7 = inlined_call_operand.hbm [shape: f32[8,128], index: 7, kind: output, shape index: {0}]   ;;  %s1301_s8 = inlined_call_operand.hbm [shape: f32[8,8], index: 8, kind: output, shape index: {1}]  }
   0x1   :  { %15 = vsyncpa [#allocation3], 0 }
   0x2   :  { %16 = vsyncpa [#allocation7], 0  ;;  %s35_s29 = sshll.u32 %s1299_s6, 4  ;;  %s36_s29 = int_to_ptr.vmem [resolvable:$true] %s35_s29 }
   0x3   :  { %s920_s30 = scalar_lea.vmem %s36_s29, 16  ;;  %p925_p1 = scmp.lt.s32.totalorder %s36_s29, %s36_s29 }
   0x4   :  { %p921_p0 = scmp.ne.s32.totalorder %s36_s29, %s920_s30  ;;  %p926_p2 = scmp.lt.s32.totalorder %s920_s30, %s920_s30 }
   0x6   :  { %p927_p3 = por %p926_p2, %p925_p1 }
   0x8   :  { %p928_p4 = pnand %p927_p3, %p921_p0 }
   0xa   :  { %931 = shalt.err (!%p928_p4)
}
   0xb   :  { %s978_s9 = smov [#allocation2]  }
   0xc   :  { %38 = dma.vmem_to_smem %s36_s29, 16, %s978_s9, [#allocation4]  }
   0xd   :  { %972 = dma.done.wait [#allocation4], 16  }
   0xe   :  { %973 = vsyncadd [#allocation4], 4294967280 }
   0xf   :  { %42 = sfence }
  0x10   :  { %v43_v0 = vld [vmem:[%s1293_s0] sm:$0xff]  ;;  %s979_s12 = smov 127   ;;  %s980_s6 = smov 126   ;;  %v773_v44 = vld [vmem:[%s1294_s1 + $0x8] ss:$0 sm:$0xff]  ;;  %vm984_vm8 = vmmov 0  }
  0x11   :  { %57 = vrot.lane.b32.xlu0 %v43_v0, %s979_s12  ;;  %s52_s13 = sld [smem:[#allocation2]]  ;;  %v746_v1 = vld [vmem:[%s1294_s1] ss:$0 sm:$0xff]  ;;  %v748_v4 = vld [vmem:[%s1294_s1 + $0x1] ss:$0 sm:$0xff]  ;;  %s981_s23 = smov 124  }
  0x12   :  { %v51_v2 = vmul.f32 %v746_v1, %v43_v0  ;;  %v750_v8 = vld [vmem:[%s1294_s1 + $0x2] ss:$0 sm:$0xff]  ;;  %v751_v12 = vld [vmem:[%s1295_s2] ss:$0 sm:$0xff]  ;;  %s756_s24 = sld [smem:[#allocation2 + $0x1]]  ;;  %s982_s0 = smov 120  }
  0x13   :  { %v752_v13 = vld [vmem:[%s1296_s3] ss:$0 sm:$0xff]  ;;  %v755_v18 = vld [vmem:[%s1294_s1 + $0x3] ss:$0 sm:$0xff]  ;;  %v758_v19 = vld [vmem:[%s1294_s1 + $0x4] ss:$0 sm:$0xff] }
  0x14   :  { %v760_v24 = vld [vmem:[%s1294_s1 + $0x5] ss:$0 sm:$0xff]  ;;  %v753_v29 = vld [vmem:[%s1297_s4] ss:$0 sm:$0xff]  ;;  %v763_v30 = vld [vmem:[%s1295_s2 + $0x1] ss:$0 sm:$0xff] }
  0x15   :  { %69 = vrot.lane.b32.xlu0 %v43_v0, %s980_s6  ;;  %v764_v31 = vld [vmem:[%s1296_s3 + $0x1] ss:$0 sm:$0xff]  ;;  %s769_s18 = sld [smem:[#allocation2 + $0x2]]  ;;  %v768_v40 = vld [vmem:[%s1294_s1 + $0x6] ss:$0 sm:$0xff] }
  0x16   :  { %v766_v32 = vld [vmem:[%s1297_s4 + $0x1] ss:$0 sm:$0xff]  ;;  %v771_v43 = vld [vmem:[%s1294_s1 + $0x7] ss:$0 sm:$0xff]  ;;  %v779_v51 = vld [vmem:[%s1297_s4 + $0x2] ss:$0 sm:$0xff] }
  0x17   :  { %v53_v3 = vstv %s52_s13  ;;  %v776_v53 = vld [vmem:[%s1295_s2 + $0x2] ss:$0 sm:$0xff]  ;;  %s782_s10 = sld [smem:[#allocation2 + $0x3]]  ;;  %v781_v60 = vld [vmem:[%s1294_s1 + $0x9] ss:$0 sm:$0xff] }
  0x18   :  { %v54_v6 = vadd.f32 %v53_v3, %v51_v2  ;;  %v116_v21 = vstv %s756_s24  ;;  %v777_v54 = vld [vmem:[%s1296_s3 + $0x2] ss:$0 sm:$0xff]  ;;  %v784_v63 = vld [vmem:[%s1294_s1 + $0xa] ss:$0 sm:$0xff]  ;;  %s793_s16 = sld [smem:[#allocation2 + $0x4]] }
  0x19   :  { %v787_v3 = vld [vmem:[%s1295_s2 + $0x3] ss:$0 sm:$0xff]  ;;  %s815_s24 = sld [smem:[#allocation2 + $0x6]] }
  0x1a   :  { %s828_s28 = sld [smem:[#allocation2 + $0x7]] }
  0x1b   :  { %v182_v42 = vstv %s769_s18  ;;  %s841_s14 = sld [smem:[#allocation2 + $0x8]] }
  0x1d   :  { %v248_v62 = vstv %s782_s10  ;;  %s802_s10 = sld [smem:[#allocation2 + $0x5]] }
  0x83   :  { %v58_v5 = vpop.permute.xlu0 %57 }
  0x84   :  { %v65_v7 = vmul.f32 %v748_v4, %v58_v5  ;;  %v788_v4 = vld [vmem:[%s1296_s3 + $0x3] ss:$0 sm:$0xff] }
  0x85   :  { %v790_v5 = vld [vmem:[%s1297_s4 + $0x3] ss:$0 sm:$0xff] }
  0x86   :  { %v66_v10 = vadd.f32 %v65_v7, %v54_v6 }
  0x87   :  { %v70_v9 = vpop.permute.xlu0 %69 }
  0x88   :  { %v77_v11 = vmul.f32 %v750_v8, %v70_v9 }
  0x8a   :  { %v78_v14 = vadd.f32 %v77_v11, %v66_v10  ;;  %v792_v11 = vld [vmem:[%s1294_s1 + $0xc] ss:$0 sm:$0xff] }
  0x8c   :  { %vm79_vm0 = vcmp.ge.f32.partialorder %v78_v14, 0.0 }
  0x8d   :  { %v94_v15 = vsel %vm79_vm0, %v751_v12, %v752_v13  ;;  %v104_v34 = vsel %vm79_vm0, %v753_v29, 0.0  ;;  %v302_v13 = vstv %s793_s16 }
  0x8e   :  { %v95_v16 = vmul.f32 %v94_v15, %v78_v14  ;;  %v799_v15 = vld [vmem:[%s1297_s4 + $0x4] ss:$0 sm:$0xff] }
  0x90   :  { %v96_v17 = vadd.f32 %v95_v16, %v43_v0 }
  0x92   :  { %120 = vrot.lane.b32.xlu1 %v96_v17, %s980_s6  ;;  %v114_v20 = vmul.f32 %v755_v18, %v96_v17  ;;  %v797_v18 = vld [vmem:[%s1296_s3 + $0x4] ss:$0 sm:$0xff] }
  0x94   :  { %v117_v25 = vadd.f32 %v116_v21, %v114_v20 }
  0x96   :  { %132 = vrot.lane.b32.xlu1 %v96_v17, %s981_s23 }
 0x104   :  { %v121_v22 = vpop.permute.xlu1 %120 }
 0x105   :  { %v128_v23 = vmul.f32 %v758_v19, %v121_v22 }
 0x107   :  { %v129_v27 = vadd.f32 %v128_v23, %v117_v25 }
 0x108   :  { %v133_v26 = vpop.permute.xlu1 %132 }
 0x109   :  { %v140_v28 = vmul.f32 %v760_v24, %v133_v26  ;;  %v801_v24 = vld [vmem:[%s1294_s1 + $0xf] ss:$0 sm:$0xff]  ;;  %v344_v26 = vstv %s802_s10 }
 0x10b   :  { %v141_v33 = vadd.f32 %v140_v28, %v129_v27  ;;  %v804_v27 = vld [vmem:[%s1294_s1 + $0x10] ss:$0 sm:$0xff]  ;;  %v806_v28 = vld [vmem:[%s1294_s1 + $0x11] ss:$0 sm:$0xff] }
 0x10d   :  { %vm142_vm1 = vcmp.ge.f32.partialorder %v141_v33, 0.0 }
 0x10e   :  { %v159_v35 = vsel %vm142_vm1, %v763_v30, %v764_v31  ;;  %v170_v36 = vsel %vm142_vm1, %v766_v32, 0.0 }
 0x10f   :  { %v160_v37 = vmul.f32 %v159_v35, %v141_v33  ;;  %v171_v38 = vadd.f32 %v170_v36, %v104_v34  ;;  %v809_v35 = vld [vmem:[%s1295_s2 + $0x5] ss:$0 sm:$0xff] }
 0x110   :  { %v810_v36 = vld [vmem:[%s1296_s3 + $0x5] ss:$0 sm:$0xff] }
 0x111   :  { %v161_v39 = vadd.f32 %v160_v37, %v96_v17  ;;  %v796_v17 = vld [vmem:[%s1295_s2 + $0x4] ss:$0 sm:$0xff]  ;;  %v812_v37 = vld [vmem:[%s1297_s4 + $0x5] ss:$0 sm:$0xff] }
 0x113   :  { %198 = vrot.lane.b32.xlu1 %v161_v39, %s982_s0  ;;  %186 = vrot.lane.b32.xlu0 %v161_v39, %s981_s23  ;;  %v180_v41 = vmul.f32 %v768_v40, %v161_v39 }
 0x115   :  { %v183_v47 = vadd.f32 %v182_v42, %v180_v41 }
 0x185   :  { %v199_v45 = vpop.permute.xlu1 %198  ;;  %v187_v46 = vpop.permute.xlu0 %186 }
 0x186   :  { %v194_v48 = vmul.f32 %v771_v43, %v187_v46  ;;  %v206_v49 = vmul.f32 %v773_v44, %v199_v45  ;;  %v814_v44 = vld [vmem:[%s1294_s1 + $0x12] ss:$0 sm:$0xff]  ;;  %v410_v46 = vstv %s815_s24 }
 0x188   :  { %v195_v50 = vadd.f32 %v194_v48, %v183_v47  ;;  %v817_v47 = vld [vmem:[%s1294_s1 + $0x13] ss:$0 sm:$0xff]  ;;  %v819_v48 = vld [vmem:[%s1294_s1 + $0x14] ss:$0 sm:$0xff] }
 0x18a   :  { %v207_v52 = vadd.f32 %v206_v49, %v195_v50 }
 0x18c   :  { %vm208_vm2 = vcmp.ge.f32.partialorder %v207_v52, 0.0 }
 0x18d   :  { %v236_v55 = vsel %vm208_vm2, %v779_v51, 0.0  ;;  %v225_v56 = vsel %vm208_vm2, %v776_v53, %v777_v54 }
 0x18e   :  { %v226_v57 = vmul.f32 %v225_v56, %v207_v52  ;;  %v237_v58 = vadd.f32 %v236_v55, %v171_v38  ;;  %v822_v55 = vld [vmem:[%s1295_s2 + $0x6] ss:$0 sm:$0xff] }
 0x18f   :  { %v823_v56 = vld [vmem:[%s1296_s3 + $0x6] ss:$0 sm:$0xff] }
 0x190   :  { %v227_v59 = vadd.f32 %v226_v57, %v161_v39  ;;  %v825_v57 = vld [vmem:[%s1297_s4 + $0x6] ss:$0 sm:$0xff] }
 0x192   :  { %252 = vrot.lane.b32.xlu0 %v227_v59, %s982_s0  ;;  %v246_v61 = vmul.f32 %v781_v60, %v227_v59 }
 0x194   :  { %v249_v1 = vadd.f32 %v248_v62, %v246_v61 }
 0x204   :  { %v253_v0 = vpop.permute.xlu0 %252 }
 0x205   :  { %v260_v2 = vmul.f32 %v784_v63, %v253_v0  ;;  %v644_v0 = vld [vmem:[%s1298_s5 + $0x78] sm:$0xff] }
 0x207   :  { %v261_v6 = vadd.f32 %v260_v2, %v249_v1  ;;  %v983_v1 = vmov 0.0   ;;  %v643_v2 = vld [vmem:[%s1298_s5 + $0x70] sm:$0xff] }
 0x208   :  { %876 = vmatprep.subr.mxu0 %v983_v1  ;;  %908 = vmatprep.mubr.msk.f32.mxu0 %vm984_vm8, %v983_v1 }
 0x209   :  { %vm262_vm3 = vcmp.ge.f32.partialorder %v261_v6, 0.0  ;;  %877 = vmatpush3.msra.mxu0 %v644_v0 }
 0x20a   :  { %v279_v7 = vsel %vm262_vm3, %v787_v3, %v788_v4  ;;  %v290_v8 = vsel %vm262_vm3, %v790_v5, 0.0  ;;  %878 = vmatprep.subr.mxu0 %v983_v1  ;;  %v642_v3 = vld [vmem:[%s1298_s5 + $0x68] sm:$0xff]  ;;  %v641_v4 = vld [vmem:[%s1298_s5 + $0x60] sm:$0xff]  ;;  %v640_v5 = vld [vmem:[%s1298_s5 + $0x58] sm:$0xff] }
 0x20b   :  { %v280_v9 = vmul.f32 %v279_v7, %v261_v6  ;;  %v291_v10 = vadd.f32 %v290_v8, %v237_v58  ;;  %879 = vmatpush3.msra.mxu0 %v643_v2  ;;  %v639_v6 = vld [vmem:[%s1298_s5 + $0x50] sm:$0xff]  ;;  %v638_v7 = vld [vmem:[%s1298_s5 + $0x48] sm:$0xff] }
 0x20c   :  { %880 = vmatprep.subr.mxu0 %v983_v1  ;;  %v827_v8 = vld [vmem:[%s1294_s1 + $0x15] ss:$0 sm:$0xff] }
 0x20d   :  { %v281_v12 = vadd.f32 %v280_v9, %v227_v59  ;;  %881 = vmatpush3.msra.mxu0 %v642_v3 }
 0x20e   :  { %882 = vmatprep.subr.mxu0 %v983_v1 }
 0x20f   :  { %v300_v14 = vmul.f32 %v792_v11, %v281_v12  ;;  %883 = vmatpush3.msra.mxu0 %v641_v4  ;;  %v830_v11 = vld [vmem:[%s1294_s1 + $0x16] ss:$0 sm:$0xff] }
 0x210   :  { %884 = vmatprep.subr.mxu0 %v983_v1 }
 0x211   :  { %v303_v16 = vadd.f32 %v302_v13, %v300_v14  ;;  %885 = vmatpush3.msra.mxu0 %v640_v5 }
 0x212   :  { %886 = vmatprep.subr.mxu0 %v983_v1 }
 0x213   :  { %vm304_vm4 = vcmp.ge.f32.partialorder %v303_v16, 0.0  ;;  %887 = vmatpush3.msra.mxu0 %v639_v6 }
 0x214   :  { %v332_v19 = vsel %vm304_vm4, %v799_v15, 0.0  ;;  %v321_v20 = vsel %vm304_vm4, %v796_v17, %v797_v18  ;;  %888 = vmatprep.subr.mxu0 %v983_v1  ;;  %v637_v15 = vld [vmem:[%s1298_s5 + $0x40] sm:$0xff]  ;;  %v636_v18 = vld [vmem:[%s1298_s5 + $0x38] sm:$0xff] }
 0x215   :  { %v333_v21 = vadd.f32 %v332_v19, %v291_v10  ;;  %v322_v22 = vmul.f32 %v321_v20, %v303_v16  ;;  %889 = vmatpush3.msra.mxu0 %v638_v7  ;;  %v476_v10 = vstv %s828_s28 }
 0x216   :  { %890 = vmatprep.subr.mxu0 %v983_v1 }
 0x217   :  { %v323_v23 = vadd.f32 %v322_v22, %v281_v12  ;;  %v832_v12 = vld [vmem:[%s1294_s1 + $0x17] ss:$0 sm:$0xff]  ;;  %891 = vmatpush3.msra.mxu0 %v637_v15  ;;  %v838_v22 = vld [vmem:[%s1297_s4 + $0x7] ss:$0 sm:$0xff] }
 0x218   :  { %892 = vmatprep.subr.mxu0 %v983_v1 }
 0x219   :  { %360 = vrot.lane.b32.xlu0 %v323_v23, %s980_s6  ;;  %348 = vrot.lane.b32.xlu1 %v323_v23, %s979_s12  ;;  %v342_v25 = vmul.f32 %v801_v24, %v323_v23  ;;  %v835_v24 = vld [vmem:[%s1295_s2 + $0x7] ss:$0 sm:$0xff]  ;;  %s852_s12 = sld [smem:[#allocation2 + $0x9]] }
 0x21a   :  { %893 = vmatpush3.msra.mxu0 %v636_v18 }
 0x21b   :  { %v345_v31 = vadd.f32 %v344_v26, %v342_v25  ;;  %894 = vmatprep.subr.mxu0 %v983_v1  ;;  %v836_v25 = vld [vmem:[%s1296_s3 + $0x7] ss:$0 sm:$0xff]  ;;  %v634_v26 = vld [vmem:[%s1298_s5 + $0x28] sm:$0xff] }
 0x28b   :  { %v361_v29 = vpop.permute.xlu0 %360  ;;  %v349_v30 = vpop.permute.xlu1 %348 }
 0x28c   :  { %v356_v32 = vmul.f32 %v804_v27, %v349_v30  ;;  %v368_v33 = vmul.f32 %v806_v28, %v361_v29  ;;  %v633_v29 = vld [vmem:[%s1298_s5 + $0x20] sm:$0xff] }
 0x28e   :  { %v357_v34 = vadd.f32 %v356_v32, %v345_v31  ;;  %v632_v32 = vld [vmem:[%s1298_s5 + $0x18] sm:$0xff] }
 0x290   :  { %v369_v38 = vadd.f32 %v368_v33, %v357_v34  ;;  %v631_v33 = vld [vmem:[%s1298_s5 + $0x10] sm:$0xff] }
 0x292   :  { %vm370_vm5 = vcmp.ge.f32.partialorder %v369_v38, 0.0 }
 0x293   :  { %v387_v39 = vsel %vm370_vm5, %v809_v35, %v810_v36  ;;  %v398_v40 = vsel %vm370_vm5, %v812_v37, 0.0  ;;  %v630_v35 = vld [vmem:[%s1298_s5 + $0x8] sm:$0xff]  ;;  %v629_v36 = vld [vmem:[%s1298_s5] sm:$0xff]  ;;  %v840_v37 = vld [vmem:[%s1294_s1 + $0x18] ss:$0 sm:$0xff] }
 0x294   :  { %v388_v41 = vmul.f32 %v387_v39, %v369_v38  ;;  %v399_v42 = vadd.f32 %v398_v40, %v333_v21  ;;  %v635_v21 = vld [vmem:[%s1298_s5 + $0x30] sm:$0xff]  ;;  %v542_v39 = vstv %s841_s14  ;;  %v843_v40 = vld [vmem:[%s1294_s1 + $0x19] ss:$0 sm:$0xff] }
 0x295   :  { %895 = vmatpush3.msra.mxu0 %v635_v21 }
 0x296   :  { %v389_v43 = vadd.f32 %v388_v41, %v323_v23  ;;  %896 = vmatprep.subr.mxu0 %v983_v1 }
 0x297   :  { %897 = vmatpush3.msra.mxu0 %v634_v26 }
 0x298   :  { %426 = vrot.lane.b32.xlu0 %v389_v43, %s981_s23  ;;  %414 = vrot.lane.b32.xlu1 %v389_v43, %s980_s6  ;;  %v408_v45 = vmul.f32 %v814_v44, %v389_v43  ;;  %v846_v44 = vld [vmem:[%s1295_s2 + $0x8] ss:$0 sm:$0xff] }
 0x299   :  { %898 = vmatprep.subr.mxu0 %v983_v1 }
 0x29a   :  { %v411_v51 = vadd.f32 %v410_v46, %v408_v45  ;;  %899 = vmatpush3.msra.mxu0 %v633_v29  ;;  %v847_v45 = vld [vmem:[%s1296_s3 + $0x8] ss:$0 sm:$0xff] }
 0x29b   :  { %900 = vmatprep.subr.mxu0 %v983_v1 }
 0x29c   :  { %901 = vmatpush3.msra.mxu0 %v632_v32 }
 0x29d   :  { %902 = vmatprep.subr.mxu0 %v983_v1 }
 0x29e   :  { %903 = vmatpush3.msra.mxu0 %v631_v33 }
 0x29f   :  { %904 = vmatprep.subr.mxu0 %v983_v1 }
 0x2a0   :  { %905 = vmatpush3.msra.mxu0 %v630_v35 }
 0x2a1   :  { %906 = vmatprep.subr.mxu0 %v983_v1 }
 0x2a2   :  { %907 = vmatpush3.msra.mxu0 %v629_v36 }
 0x30a   :  { %v427_v49 = vpop.permute.xlu0 %426  ;;  %v415_v50 = vpop.permute.xlu1 %414 }
 0x30b   :  { %v422_v52 = vmul.f32 %v817_v47, %v415_v50  ;;  %v434_v53 = vmul.f32 %v819_v48, %v427_v49  ;;  %v851_v49 = vld [vmem:[%s1294_s1 + $0x1b] ss:$0 sm:$0xff]  ;;  %v849_v50 = vld [vmem:[%s1297_s4 + $0x8] ss:$0 sm:$0xff]  ;;  %s985_s1 = smov [#allocation5]  }
 0x30c   :  { %s723_s6 = sshll.u32 %s985_s1, 4  ;;  %s724_s6 = int_to_ptr.vmem [resolvable:$true] %s723_s6 }
 0x30d   :  { %v423_v54 = vadd.f32 %v422_v52, %v411_v51  ;;  %v596_v52 = vstv %s852_s12  ;;  %p937_p6 = scmp.lt.s32.totalorder %s724_s6, %s724_s6 }
 0x30f   :  { %v435_v58 = vadd.f32 %v434_v53, %v423_v54 }
 0x311   :  { %vm436_vm6 = vcmp.ge.f32.partialorder %v435_v58, 0.0 }
 0x312   :  { %v453_v59 = vsel %vm436_vm6, %v822_v55, %v823_v56  ;;  %v464_v60 = vsel %vm436_vm6, %v825_v57, 0.0  ;;  %v858_v56 = vld [vmem:[%s1297_s4 + $0x9] ss:$0 sm:$0xff]  ;;  %s932_s4 = scalar_lea.vmem %s724_s6, 128 }
 0x313   :  { %v454_v61 = vmul.f32 %v453_v59, %v435_v58  ;;  %v465_v62 = vadd.f32 %v464_v60, %v399_v42  ;;  %v855_v57 = vld [vmem:[%s1295_s2 + $0x9] ss:$0 sm:$0xff]  ;;  %p933_p5 = scmp.ne.s32.totalorder %s724_s6, %s932_s4  ;;  %p938_p7 = scmp.lt.s32.totalorder %s932_s4, %s932_s4 }
 0x314   :  { %v856_v58 = vld [vmem:[%s1296_s3 + $0x9] ss:$0 sm:$0xff] }
 0x315   :  { %v1168_v63 = vadd.f32 %v454_v61, %v389_v43  ;;  %p939_p8 = por %p938_p7, %p937_p6 }
 0x317   :  { %492 = vrot.lane.b32.xlu0 %v1168_v63, %s982_s0  ;;  %480 = vrot.lane.b32.xlu1 %v1168_v63, %s981_s23  ;;  %v474_v9 = vmul.f32 %v827_v8, %v1168_v63  ;;  %p940_p9 = pnand %p939_p8, %p933_p5 }
 0x319   :  { %v477_v16 = vadd.f32 %v476_v10, %v474_v9 }
 0x389   :  { %v493_v13 = vpop.permute.xlu0 %492  ;;  %v481_v14 = vpop.permute.xlu1 %480 }
 0x38a   :  { %v488_v17 = vmul.f32 %v830_v11, %v481_v14  ;;  %v500_v19 = vmul.f32 %v832_v12, %v493_v13 }
 0x38c   :  { %v489_v20 = vadd.f32 %v488_v17, %v477_v16 }
 0x38e   :  { %v501_v23 = vadd.f32 %v500_v19, %v489_v20 }
 0x390   :  { %vm502_vm7 = vcmp.ge.f32.partialorder %v501_v23, 0.0 }
 0x391   :  { %v530_v27 = vsel %vm502_vm7, %v838_v22, 0.0  ;;  %v519_v28 = vsel %vm502_vm7, %v835_v24, %v836_v25 }
 0x392   :  { %v520_v30 = vmul.f32 %v519_v28, %v501_v23  ;;  %v531_v31 = vadd.f32 %v530_v27, %v465_v62 }
 0x394   :  { %v521_v34 = vadd.f32 %v520_v30, %v1168_v63 }
 0x396   :  { %546 = vrot.lane.b32.xlu1 %v521_v34, %s982_s0  ;;  %v540_v38 = vmul.f32 %v840_v37, %v521_v34 }
 0x398   :  { %v543_v42 = vadd.f32 %v542_v39, %v540_v38 }
 0x408   :  { %v547_v41 = vpop.permute.xlu1 %546 }
 0x409   :  { %v554_v43 = vmul.f32 %v843_v40, %v547_v41 }
 0x40b   :  { %v555_v46 = vadd.f32 %v554_v43, %v543_v42 }
 0x40d   :  { %vm556_vm9 = vcmp.ge.f32.partialorder %v555_v46, 0.0 }
 0x40e   :  { %v573_v47 = vsel %vm556_vm9, %v846_v44, %v847_v45  ;;  %v584_v54 = vsel %vm556_vm9, %v849_v50, 0.0 }
 0x40f   :  { %v574_v48 = vmul.f32 %v573_v47, %v555_v46  ;;  %v585_v59 = vadd.f32 %v584_v54, %v531_v31 }
 0x411   :  { %v575_v51 = vadd.f32 %v574_v48, %v521_v34 }
 0x413   :  { %v594_v53 = vmul.f32 %v851_v49, %v575_v51 }
 0x415   :  { %v597_v55 = vadd.f32 %v596_v52, %v594_v53 }
 0x417   :  { %vm598_vm10 = vcmp.ge.f32.partialorder %v597_v55, 0.0 }
 0x418   :  { %v626_v60 = vsel %vm598_vm10, %v858_v56, 0.0  ;;  %v615_v61 = vsel %vm598_vm10, %v855_v57, %v856_v58 }
 0x419   :  { %v627_v62 = vadd.f32 %v626_v60, %v585_v59  ;;  %v616_v63 = vmul.f32 %v615_v61, %v597_v55 }
 0x41b   :  { %909 = vmatmul.mubr.f32.vlgmr.msra.gmra.mxu0 %v627_v62  ;;  %v617_v0 = vadd.f32 %v616_v63, %v575_v51 }
 0x41d   :  { %628 = vst [vmem:[#allocation5] sm:$0xff] %v617_v0 }
 0x41e   :  { %943 = shalt.err (!%p940_p9)
}
 0x41f   :  { %726 = dma.vmem_to_hbm [thread:$0]  %s724_s6, 128, %s1300_s7, [#allocation3]   ;;  %vm715_vm11 = vcmask 64512  }
 0x420   :  { %s986_s9 = smov [#allocation6]  }
 0x421   :  { %s733_s10 = sshll.u32 %s986_s9, 4  ;;  %s734_s10 = int_to_ptr.vmem [resolvable:$true] %s733_s10 }
 0x422   :  { %s952_s11 = scalar_lea.vmem %s734_s10, 128  ;;  %p957_p11 = scmp.lt.s32.totalorder %s734_s10, %s734_s10 }
 0x423   :  { %p953_p10 = scmp.ne.s32.totalorder %s734_s10, %s952_s11  ;;  %p958_p12 = scmp.lt.s32.totalorder %s952_s11, %s952_s11 }
 0x425   :  { %p959_p13 = por %p958_p12, %p957_p11 }
 0x427   :  { %p960_p0 = pnand %p959_p13, %p953_p10 }
 0x4db   :  { %v711_v1 = vpop.f32.mrf.mxu0 }
 0x4dc   :  { %716 = vst.msk [vmem:[#allocation6] sm:$0xff] %vm715_vm11, %v711_v1 }
 0x4dd   :  { %v910_v2 = vpop.f32.mrf.mxu0 }
 0x4de   :  { %963 = shalt.err (!%p960_p0)
}
 0x4df   :  { %736 = dma.vmem_to_hbm [thread:$0]  %s734_s10, 128, %s1301_s8, [#allocation7]  }
 0x4e0   :  { %974 = dma.done.wait [#allocation3], 128  }
 0x4e1   :  { %975 = vsyncadd [#allocation3], 4294967168 }
 0x4e2   :  { %976 = dma.done.wait [#allocation7], 128  }
 0x4e3   :  { %977 = vsyncadd [#allocation7], 4294967168 }
 0x4e4   :  { %743 = vsyncpa [#allocation3], 1 }
 0x4e5   :  { %744 = vsyncpa [#allocation7], 1 }
 0x4e6   :  { %745 = vsyncpa [#allocation4], 1 }

</bundles_post_ra>
